<compile_context>
chip_gen: v7x
topology: tpu7x:2x2x1
jax: 0.10.0
libtpu: 0.0.40
codegen_flags: <defaults>
</compile_context>

<pallas_src>
import functools

import jax
import jax.numpy as jnp
from jax import lax
from jax.experimental import pallas as pl
from jax.experimental.pallas import tpu as pltpu

_EPS = 1e-5
_NEG_INF = float("-inf")


def _round_up(x, m):
    return ((x + m - 1) // m) * m


# ----------------------------------------------------------------------------
# Kernel 1: one MLP stage, tiled over points.
#   y = scale * x + shift   (previous layer's BN affine, folded on the host)
#   y = relu(y)             (optional)
#   z = y @ W + b           (bf16 operands, f32 MXU accumulation)
#   store z in bf16; optionally accumulate masked batch sum / sum-of-squares
#   of z into resident (1, C) outputs (next stage turns them into its affine).
# ----------------------------------------------------------------------------
def _layer_kernel(x_ref, scale_ref, shift_ref, w_ref, b_ref, *out_refs,
                  tm, n_valid, relu, acc_stats):
    i = pl.program_id(0)
    z_ref = out_refs[0]

    y = x_ref[...].astype(jnp.float32) * scale_ref[...] + shift_ref[...]
    if relu:
        y = jnp.maximum(y, 0.0)
    z = jnp.dot(y.astype(jnp.bfloat16), w_ref[...],
                preferred_element_type=jnp.float32) + b_ref[...]
    z_ref[...] = z.astype(jnp.bfloat16)

    if acc_stats:
        sum_ref, sq_ref = out_refs[1], out_refs[2]

        @pl.when(i == 0)
        def _init():
            sum_ref[...] = jnp.zeros_like(sum_ref)
            sq_ref[...] = jnp.zeros_like(sq_ref)

        # 0/1 row mask excludes padded rows from the batch statistics; the
        # sums ride the (otherwise idle) MXU as (1, TM) @ (TM, C) matmuls.
        col = lax.broadcasted_iota(jnp.int32, (1, tm), 1) + i * tm
        mrow = (col < n_valid).astype(jnp.float32)                   # (1, TM)
        sum_ref[...] += jnp.dot(mrow, z, preferred_element_type=jnp.float32)
        sq_ref[...] += jnp.dot(mrow, z * z, preferred_element_type=jnp.float32)


def _mlp_layer(x, scale, shift, w, b, *, tm, n_valid, relu, acc_stats):
    n_pad, cin = x.shape
    cout = w.shape[1]
    grid = (n_pad // tm,)

    in_specs = [
        pl.BlockSpec((tm, cin), lambda i: (i, 0)),
        pl.BlockSpec((1, cin), lambda i: (0, 0)),
        pl.BlockSpec((1, cin), lambda i: (0, 0)),
        # TODO(synk): weights/affines keep default double-buffering; at <=128 KiB
        # each the extra VMEM is negligible even on v7x (64 MiB).
        pl.BlockSpec((cin, cout), lambda i: (0, 0)),
        pl.BlockSpec((1, cout), lambda i: (0, 0)),
    ]
    z_shape = jax.ShapeDtypeStruct((n_pad, cout), jnp.bfloat16)
    z_spec = pl.BlockSpec((tm, cout), lambda i: (i, 0))

    if acc_stats:
        out_shape = (z_shape,
                     jax.ShapeDtypeStruct((1, cout), jnp.float32),
                     jax.ShapeDtypeStruct((1, cout), jnp.float32))
        out_specs = (z_spec,
                     pl.BlockSpec((1, cout), lambda i: (0, 0)),
                     pl.BlockSpec((1, cout), lambda i: (0, 0)))
        # Resident stats accumulator across the point-tile axis -> must stay
        # "arbitrary"; a parallel split would race on the shared stats block.
        sem = ("arbitrary",)
    else:
        out_shape = z_shape
        out_specs = z_spec
        sem = ("parallel",)   # final layer: independent tiles, megacore-splittable

    kernel = functools.partial(_layer_kernel, tm=tm, n_valid=n_valid,
                               relu=relu, acc_stats=acc_stats)
    return pl.pallas_call(
        kernel,
        out_shape=out_shape,
        grid=grid,
        in_specs=in_specs,
        out_specs=out_specs,
        compiler_params=pltpu.CompilerParams(
            dimension_semantics=sem,
            vmem_limit_bytes=32 * 1024 * 1024),
    )(x, scale, shift, w, b)


def _run_point_mlp(feats, params, *, tm):
    """BN0 -> (Linear -> BN -> ReLU) x3 -> Linear, BN in training mode."""
    N, din = feats.shape
    n_pad = _round_up(N, tm)
    din_p = _round_up(din, 16)          # pad 9 -> 16 for bf16 sublane packing

    x = jnp.pad(feats.astype(jnp.float32),
                ((0, n_pad - N), (0, din_p - din)))

    # bn0 batch statistics on the tiny raw (N, din) input: plain jnp.
    mu0 = jnp.mean(feats, axis=0, keepdims=True)
    var0 = jnp.mean((feats - mu0) ** 2, axis=0, keepdims=True)
    s0 = params["bn0_g"] * lax.rsqrt(var0 + _EPS)
    scale0 = jnp.pad(s0, ((0, 0), (0, din_p - din)))              # pad cols -> 0
    shift0 = jnp.pad(params["bn0_b"] - mu0 * s0, ((0, 0), (0, din_p - din)))

    w1 = jnp.pad(params["w1"], ((0, din_p - din), (0, 0))).astype(jnp.bfloat16)
    w2 = params["w2"].astype(jnp.bfloat16)
    w3 = params["w3"].astype(jnp.bfloat16)
    w4 = params["w4"].astype(jnp.bfloat16)

    def to_affine(ssum, ssq, g, b):
        mu = ssum / N
        var = jnp.maximum(ssq / N - mu * mu, 0.0)   # biased var (BN training mode)
        s = g * lax.rsqrt(var + _EPS)
        return s, b - mu * s

    z1, s1, q1 = _mlp_layer(x, scale0, shift0, w1, params["b1"],
                            tm=tm, n_valid=N, relu=False, acc_stats=True)
    a1, c1 = to_affine(s1, q1, params["bn1_g"], params["bn1_b"])
    z2, s2, q2 = _mlp_layer(z1, a1, c1, w2, params["b2"],
                            tm=tm, n_valid=N, relu=True, acc_stats=True)
    a2, c2 = to_affine(s2, q2, params["bn2_g"], params["bn2_b"])
    z3, s3, q3 = _mlp_layer(z2, a2, c2, w3, params["b3"],
                            tm=tm, n_valid=N, relu=True, acc_stats=True)
    a3, c3 = to_affine(s3, q3, params["bn3_g"], params["bn3_b"])
    h = _mlp_layer(z3, a3, c3, w4, params["b4"],
                   tm=tm, n_valid=N, relu=True, acc_stats=False)
    return h                      # (n_pad, Dout) bf16


# ----------------------------------------------------------------------------
# Kernel 2: vectorized segment max (scatter_max) over sorted voxel ids.
# Grid = (voxel blocks [parallel], span within the block's point-tile range).
# The (tu, Dout) output block is resident across the inner axis.
# ----------------------------------------------------------------------------
def _pool_kernel(lo_ref, hi_ref, inv_ref, h_ref, out_ref, *, tu):
    j = pl.program_id(0)     # voxel block
    i = pl.program_id(1)     # offset within this block's point-tile span

    @pl.when(i == 0)
    def _init():
        out_ref[...] = jnp.full(out_ref.shape, _NEG_INF, dtype=out_ref.dtype)

    # Beyond the block's real span the index_map clamps to the last tile; skip
    # the (idempotent) recompute there.
    @pl.when(lo_ref[j] + i <= hi_ref[j])
    def _accumulate():
        inv = inv_ref[...]                          # (tn, 1)  int32 voxel ids
        h = h_ref[...]                              # (tn, Dout) bf16
        base = j * tu
        neg = jnp.array(-jnp.inf, dtype=h.dtype)

        def body(u, carry):
            mask = inv == (base + u)                              # (tn, 1)
            masked = jnp.where(mask, h, neg)                      # bf16 select
            row = jnp.max(masked.astype(jnp.float32), axis=0, keepdims=True)
            out_ref[pl.ds(u, 1), :] = jnp.maximum(out_ref[pl.ds(u, 1), :], row)
            return carry

        lax.fori_loop(0, tu, body, 0, unroll=True)


def _segment_max(h, inv_col, u_pad, *, tn, tu):
    """Per-voxel max over points.  `h` / `inv_col` must be sorted by voxel id
    and padded (pad rows carry the sentinel id `u_pad`)."""
    n_pad, dout = h.shape
    num_pt = n_pad // tn
    num_vb = u_pad // tu

    # Per voxel block, the contiguous point-tile range holding its points,
    # computed on device (no host cumsum / counts round trip).
    inv_flat = inv_col.reshape(-1)
    first_id = jnp.arange(num_vb, dtype=jnp.int32) * tu
    first_pt = jnp.searchsorted(inv_flat, first_id, side="left")
    end_pt = jnp.searchsorted(inv_flat, first_id + tu, side="left")
    last_pt = jnp.maximum(end_pt - 1, first_pt)
    tile_lo = jnp.clip(first_pt // tn, 0, num_pt - 1).astype(jnp.int32)
    tile_hi = jnp.clip(last_pt // tn, 0, num_pt - 1).astype(jnp.int32)

    # Inner grid extent = widest span of any voxel block (instead of the full
    # num_vb x num_pt cross product).  One tiny scalar readback, bucketed to a
    # power of two so Mosaic compiles are reused across point clouds.
    # TODO(synk): under full jit this would need a static upper bound instead.
    span_max = int(jnp.max(tile_hi - tile_lo + 1))
    span_max = min(pl.next_power_of_2(max(span_max, 1)), num_pt)

    def _pt_map(j, i, lo, hi):
        return (jnp.minimum(lo[j] + i, hi[j]), 0)

    grid_spec = pltpu.PrefetchScalarGridSpec(
        num_scalar_prefetch=2,
        grid=(num_vb, span_max),
        in_specs=[
            pl.BlockSpec((tn, 1), _pt_map),
            pl.BlockSpec((tn, dout), _pt_map),
        ],
        out_specs=pl.BlockSpec((tu, dout), lambda j, i, lo, hi: (j, 0)),
    )
    return pl.pallas_call(
        functools.partial(_pool_kernel, tu=tu),
        out_shape=jax.ShapeDtypeStruct((u_pad, dout), jnp.float32),
        grid_spec=grid_spec,
        compiler_params=pltpu.CompilerParams(
            dimension_semantics=("parallel", "arbitrary"),
            vmem_limit_bytes=32 * 1024 * 1024),
    )(tile_lo, tile_hi, inv_col, h)


# ----------------------------------------------------------------------------
# Parameters + wrapper
# ----------------------------------------------------------------------------
def init_params(key, input_dim=9, hidden_dims=(64, 128, 256), out_feature_dim=256):
    """Deterministic synthetic parameters matching the module's shapes."""
    ks = jax.random.split(key, 16)

    def lin(kw, fan_in, fan_out):
        w = jax.random.normal(kw, (fan_in, fan_out), jnp.float32) * jnp.sqrt(2.0 / fan_in)
        b = jnp.full((1, fan_out), 0.01, jnp.float32)
        return w, b

    def bn_par(kg, kb, c):
        g = 1.0 + 0.1 * jax.random.normal(kg, (1, c), jnp.float32)
        b = 0.1 * jax.random.normal(kb, (1, c), jnp.float32)
        return g, b

    h0, h1, h2 = hidden_dims
    p = {}
    p["bn0_g"], p["bn0_b"] = bn_par(ks[0], ks[1], input_dim)
    p["w1"], p["b1"] = lin(ks[2], input_dim, h0)
    p["bn1_g"], p["bn1_b"] = bn_par(ks[3], ks[4], h0)
    p["w2"], p["b2"] = lin(ks[5], h0, h1)
    p["bn2_g"], p["bn2_b"] = bn_par(ks[6], ks[7], h1)
    p["w3"], p["b3"] = lin(ks[8], h1, h2)
    p["bn3_g"], p["bn3_b"] = bn_par(ks[9], ks[10], h2)
    p["w4"], p["b4"] = lin(ks[11], h2, out_feature_dim)
    return p


def cylindrical_point_encoder(feats, coords, params, perm_key, *,
                              u_bucket=64, tn=128, tu=32, tm_max=1024):
    """Mirrors CylindricalPointEncoder.forward (feature_transform_dim=None)."""
    N = feats.shape[0]

    # torch.randperm shuffle (output is permutation-invariant; kept for fidelity)
    perm = jax.random.permutation(perm_key, N)
    feats = feats[perm]
    coords = coords[perm]

    # torch.unique(coords, return_inverse=True, dim=0)
    unq_coords, unq_inv = jnp.unique(coords, axis=0, return_inverse=True)
    unq_inv = unq_inv.reshape(-1).astype(jnp.int32)
    U = int(unq_coords.shape[0])
    u_pad = _round_up(_round_up(max(U, 1), max(u_bucket, tu)), tu)

    # Sort points by voxel id so each voxel's points are contiguous (enables
    # the vectorized segment max).  MLP / BN batch stats are order-invariant.
    order = jnp.argsort(unq_inv)
    feats_sorted = feats[order]
    inv_sorted = unq_inv[order]

    # Point-tile size: multiple of tn so the MLP padding also serves the pool.
    tm = min(tm_max, _round_up(N, tn))
    h = _run_point_mlp(feats_sorted, params, tm=tm)            # (n_pad, Dout) bf16
    n_pad = h.shape[0]

    inv_col = jnp.pad(inv_sorted, (0, n_pad - N),
                      constant_values=u_pad).reshape(n_pad, 1)   # sentinel id

    pooled = _segment_max(h, inv_col, u_pad, tn=tn, tu=tu)       # (u_pad, Dout) f32
    feats_max_pooled = pooled[:U]

    # TODO(synk): feature_transform is None by default (feature_transform_dim=None)
    # so it is omitted; torch casts unq_coords to int64 -- returned as int32 (no x64).
    return feats_max_pooled, unq_coords.astype(jnp.int32)


def _reference_forward(feats, unq_inv, params, num_voxels):
    """Pure-JAX f32 reference of the PyTorch module (training-mode BN)."""
    def bn(h, g, b):
        mu = jnp.mean(h, axis=0, keepdims=True)
        var = jnp.mean((h - mu) ** 2, axis=0, keepdims=True)
        return (h - mu) / jnp.sqrt(var + _EPS) * g + b

    h = bn(feats, params["bn0_g"], params["bn0_b"])
    h = jnp.maximum(bn(h @ params["w1"] + params["b1"],
                       params["bn1_g"], params["bn1_b"]), 0.0)
    h = jnp.maximum(bn(h @ params["w2"] + params["b2"],
                       params["bn2_g"], params["bn2_b"]), 0.0)
    h = jnp.maximum(bn(h @ params["w3"] + params["b3"],
                       params["bn3_g"], params["bn3_b"]), 0.0)
    h = h @ params["w4"] + params["b4"]
    return jax.ops.segment_max(h, unq_inv, num_segments=num_voxels)


if __name__ == "__main__":
    key = jax.random.PRNGKey(0)
    k_feat, k_coord, k_param, k_perm = jax.random.split(key, 4)

    N, INPUT_DIM = 256, 9
    feats = jax.random.normal(k_feat, (N, INPUT_DIM), jnp.float32)
    coords = jax.random.randint(k_coord, (N, 3), 0, 4, jnp.int32)  # many duplicate voxels
    params = init_params(k_param, input_dim=INPUT_DIM,
                         hidden_dims=(64, 128, 256), out_feature_dim=256)

    pooled, unq_coords = cylindrical_point_encoder(feats, coords, params, k_perm)
    pooled = jax.block_until_ready(pooled)
    unq_coords = jax.block_until_ready(unq_coords)

    # Pure-JAX f32 reference (permutation-invariant, so no shuffle needed).
    uc_ref, ui_ref = jnp.unique(coords, axis=0, return_inverse=True)
    ref = _reference_forward(feats, ui_ref.reshape(-1), params, int(uc_ref.shape[0]))

    assert pooled.shape[1] == 256 and pooled.shape[0] == unq_coords.shape[0]
    assert bool(jnp.all(jnp.isfinite(pooled)))
    max_err = float(jnp.max(jnp.abs(pooled - ref)))
    assert max_err < 0.25, f"max abs diff vs reference too large: {max_err}"
    print("KERNEL_OK")
</pallas_src>

<mosaic_0001>
module attributes {stable_mosaic.version = 11 : i64} {
  func.func @_layer_kernel(%arg0: i32, %arg1: memref<256x16xf32, #tpu.memory_space<vmem>>, %arg2: memref<1x16xf32, #tpu.memory_space<vmem>>, %arg3: memref<1x16xf32, #tpu.memory_space<vmem>>, %arg4: memref<16x64xbf16, #tpu.memory_space<vmem>>, %arg5: memref<1x64xf32, #tpu.memory_space<vmem>>, %arg6: memref<256x64xbf16, #tpu.memory_space<vmem>>, %arg7: memref<1x64xf32, #tpu.memory_space<vmem>>, %arg8: memref<1x64xf32, #tpu.memory_space<vmem>>) attributes {dimension_semantics = [#tpu.dimension_semantics<arbitrary>], iteration_bounds = array<i64: 1>, scalar_prefetch = 0 : i64, scratch_operands = 0 : i64, tpu.core_type = #tpu.core_type<tc>, window_params = [{transform_indices = @transform_0, window_bounds = array<i64: 256, 16>}, {pipeline_mode = #tpu.pipeline_mode<synchronous>, transform_indices = @transform_1, window_bounds = array<i64: 1, 16>}, {pipeline_mode = #tpu.pipeline_mode<synchronous>, transform_indices = @transform_2, window_bounds = array<i64: 1, 16>}, {pipeline_mode = #tpu.pipeline_mode<synchronous>, transform_indices = @transform_3, window_bounds = array<i64: 16, 64>}, {pipeline_mode = #tpu.pipeline_mode<synchronous>, transform_indices = @transform_4, window_bounds = array<i64: 1, 64>}, {transform_indices = @transform_5, window_bounds = array<i64: 256, 64>}, {pipeline_mode = #tpu.pipeline_mode<synchronous>, transform_indices = @transform_6, window_bounds = array<i64: 1, 64>}, {pipeline_mode = #tpu.pipeline_mode<synchronous>, transform_indices = @transform_7, window_bounds = array<i64: 1, 64>}]} {
    %c0 = arith.constant 0 : index
    %c0_0 = arith.constant 0 : index
    %0 = vector.load %arg1[%c0, %c0_0] : memref<256x16xf32, #tpu.memory_space<vmem>>, vector<256x16xf32>
    %c0_1 = arith.constant 0 : index
    %c0_2 = arith.constant 0 : index
    %1 = vector.load %arg2[%c0_1, %c0_2] : memref<1x16xf32, #tpu.memory_space<vmem>>, vector<1x16xf32>
    %2 = vector.broadcast %1 : vector<1x16xf32> to vector<256x16xf32>
    %3 = arith.mulf %0, %2 : vector<256x16xf32>
    %c0_3 = arith.constant 0 : index
    %c0_4 = arith.constant 0 : index
    %4 = vector.load %arg3[%c0_3, %c0_4] : memref<1x16xf32, #tpu.memory_space<vmem>>, vector<1x16xf32>
    %5 = vector.broadcast %4 : vector<1x16xf32> to vector<256x16xf32>
    %6 = arith.addf %3, %5 : vector<256x16xf32>
    %7 = arith.truncf %6 : vector<256x16xf32> to vector<256x16xbf16>
    %c0_5 = arith.constant 0 : index
    %c0_6 = arith.constant 0 : index
    %8 = vector.load %arg4[%c0_5, %c0_6] : memref<16x64xbf16, #tpu.memory_space<vmem>>, vector<16x64xbf16>
    %cst = arith.constant dense<0.000000e+00> : vector<256x64xf32>
    %9 = tpu.matmul %7, %8, %cst {dimension_numbers = #tpu.dot_dimension_numbers<[1], [0], [0], [1], [0, 0, 1, 1], [], []>} : vector<256x16xbf16>, vector<16x64xbf16>, vector<256x64xf32> -> vector<256x64xf32>
    %c0_7 = arith.constant 0 : index
    %c0_8 = arith.constant 0 : index
    %10 = vector.load %arg5[%c0_7, %c0_8] : memref<1x64xf32, #tpu.memory_space<vmem>>, vector<1x64xf32>
    %11 = vector.broadcast %10 : vector<1x64xf32> to vector<256x64xf32>
    %12 = arith.addf %9, %11 : vector<256x64xf32>
    %13 = arith.truncf %12 : vector<256x64xf32> to vector<256x64xbf16>
    %c0_9 = arith.constant 0 : index
    %c0_10 = arith.constant 0 : index
    %14 = vector.load %arg6[%c0_9, %c0_10] : memref<256x64xbf16, #tpu.memory_space<vmem>>, vector<256x64xbf16>
    tpu.vector_store %arg6[%c0_9, %c0_10], %13 {strides = array<i32>} : memref<256x64xbf16, #tpu.memory_space<vmem>>, vector<256x64xbf16>,
    %c0_i32 = arith.constant 0 : i32
    %15 = arith.cmpi eq, %arg0, %c0_i32 : i32
    %16 = arith.extui %15 : i1 to i32
    %c0_i32_11 = arith.constant 0 : i32
    %17 = arith.cmpi ne, %16, %c0_i32_11 : i32
    scf.if %17 {
      %cst_23 = arith.constant 0.000000e+00 : f32
      %35 = vector.broadcast %cst_23 : f32 to vector<1x64xf32>
      %c0_24 = arith.constant 0 : index
      %c0_25 = arith.constant 0 : index
      %36 = vector.load %arg7[%c0_24, %c0_25] : memref<1x64xf32, #tpu.memory_space<vmem>>, vector<1x64xf32>
      tpu.vector_store %arg7[%c0_24, %c0_25], %35 {strides = array<i32>} : memref<1x64xf32, #tpu.memory_space<vmem>>, vector<1x64xf32>,
      %cst_26 = arith.constant 0.000000e+00 : f32
      %37 = vector.broadcast %cst_26 : f32 to vector<1x64xf32>
      %c0_27 = arith.constant 0 : index
      %c0_28 = arith.constant 0 : index
      %38 = vector.load %arg8[%c0_27, %c0_28] : memref<1x64xf32, #tpu.memory_space<vmem>>, vector<1x64xf32>
      tpu.vector_store %arg8[%c0_27, %c0_28], %37 {strides = array<i32>} : memref<1x64xf32, #tpu.memory_space<vmem>>, vector<1x64xf32>,
    } else {
    }
    %18 = tpu.iota {dimensions = array<i32: 1>} : vector<1x256xi32>
    %c256_i32 = arith.constant 256 : i32
    %19 = arith.muli %arg0, %c256_i32 : i32
    %20 = vector.broadcast %19 : i32 to vector<1x256xi32>
    %21 = arith.addi %18, %20 : vector<1x256xi32>
    %c256_i32_12 = arith.constant 256 : i32
    %22 = vector.broadcast %c256_i32_12 : i32 to vector<1x256xi32>
    %23 = arith.cmpi slt, %21, %22 : vector<1x256xi32>
    %24 = arith.extui %23 : vector<1x256xi1> to vector<1x256xi32>
    %25 = arith.sitofp %24 : vector<1x256xi32> to vector<1x256xf32>
    %c0_13 = arith.constant 0 : index
    %c0_14 = arith.constant 0 : index
    %26 = vector.load %arg7[%c0_13, %c0_14] : memref<1x64xf32, #tpu.memory_space<vmem>>, vector<1x64xf32>
    %cst_15 = arith.constant dense<0.000000e+00> : vector<1x64xf32>
    %27 = tpu.matmul %25, %12, %cst_15 {dimension_numbers = #tpu.dot_dimension_numbers<[1], [0], [0], [1], [0, 0, 1, 1], [], []>} : vector<1x256xf32>, vector<256x64xf32>, vector<1x64xf32> -> vector<1x64xf32>
    %28 = arith.addf %26, %27 : vector<1x64xf32>
    %c0_16 = arith.constant 0 : index
    %c0_17 = arith.constant 0 : index
    %29 = vector.load %arg7[%c0_16, %c0_17] : memref<1x64xf32, #tpu.memory_space<vmem>>, vector<1x64xf32>
    tpu.vector_store %arg7[%c0_16, %c0_17], %28 {strides = array<i32>} : memref<1x64xf32, #tpu.memory_space<vmem>>, vector<1x64xf32>,
    %c0_18 = arith.constant 0 : index
    %c0_19 = arith.constant 0 : index
    %30 = vector.load %arg8[%c0_18, %c0_19] : memref<1x64xf32, #tpu.memory_space<vmem>>, vector<1x64xf32>
    %31 = arith.mulf %12, %12 : vector<256x64xf32>
    %cst_20 = arith.constant dense<0.000000e+00> : vector<1x64xf32>
    %32 = tpu.matmul %25, %31, %cst_20 {dimension_numbers = #tpu.dot_dimension_numbers<[1], [0], [0], [1], [0, 0, 1, 1], [], []>} : vector<1x256xf32>, vector<256x64xf32>, vector<1x64xf32> -> vector<1x64xf32>
    %33 = arith.addf %30, %32 : vector<1x64xf32>
    %c0_21 = arith.constant 0 : index
    %c0_22 = arith.constant 0 : index
    %34 = vector.load %arg8[%c0_21, %c0_22] : memref<1x64xf32, #tpu.memory_space<vmem>>, vector<1x64xf32>
    tpu.vector_store %arg8[%c0_21, %c0_22], %33 {strides = array<i32>} : memref<1x64xf32, #tpu.memory_space<vmem>>, vector<1x64xf32>,
    return
  }
  func.func @transform_0(%arg0: i32) -> (i32, i32) {
    %c0_i32 = arith.constant 0 : i32
    %c0_i32_0 = arith.constant 0 : i32
    return %arg0, %c0_i32 : i32, i32
  }
  func.func @transform_1(%arg0: i32) -> (i32, i32) {
    %c0_i32 = arith.constant 0 : i32
    %c0_i32_0 = arith.constant 0 : i32
    %c0_i32_1 = arith.constant 0 : i32
    return %c0_i32, %c0_i32_0 : i32, i32
  }
  func.func @transform_2(%arg0: i32) -> (i32, i32) {
    %c0_i32 = arith.constant 0 : i32
    %c0_i32_0 = arith.constant 0 : i32
    %c0_i32_1 = arith.constant 0 : i32
    return %c0_i32, %c0_i32_0 : i32, i32
  }
  func.func @transform_3(%arg0: i32) -> (i32, i32) {
    %c0_i32 = arith.constant 0 : i32
    %c0_i32_0 = arith.constant 0 : i32
    %c0_i32_1 = arith.constant 0 : i32
    return %c0_i32, %c0_i32_0 : i32, i32
  }
  func.func @transform_4(%arg0: i32) -> (i32, i32) {
    %c0_i32 = arith.constant 0 : i32
    %c0_i32_0 = arith.constant 0 : i32
    %c0_i32_1 = arith.constant 0 : i32
    return %c0_i32, %c0_i32_0 : i32, i32
  }
  func.func @transform_5(%arg0: i32) -> (i32, i32) {
    %c0_i32 = arith.constant 0 : i32
    %c0_i32_0 = arith.constant 0 : i32
    return %arg0, %c0_i32 : i32, i32
  }
  func.func @transform_6(%arg0: i32) -> (i32, i32) {
    %c0_i32 = arith.constant 0 : i32
    %c0_i32_0 = arith.constant 0 : i32
    %c0_i32_1 = arith.constant 0 : i32
    return %c0_i32, %c0_i32_0 : i32, i32
  }
  func.func @transform_7(%arg0: i32) -> (i32, i32) {
    %c0_i32 = arith.constant 0 : i32
    %c0_i32_0 = arith.constant 0 : i32
    %c0_i32_1 = arith.constant 0 : i32
    return %c0_i32, %c0_i32_0 : i32, i32
  }
}

</mosaic_0001>

<bundles_post_ra>
// kernel: tpu_custom_call.1
= control target key start
LH: loop header
LB: loop body
LE: loop exit
PB: predicated region body
PF: predicated region fallthrough
CT: control target
= control target key end

     0   :  { %13 = vsyncpa [#allocation3], 0  ;;  %vm167_vm0 = vcmask 130048   ;;  %s1765_s0 = inlined_call_operand.vmem [shape: f32[256,16], index: 0, kind: input, shape index: {}]   ;;  %s1766_s1 = inlined_call_operand.vmem [shape: f32[1,16], index: 1, kind: input, shape index: {}]   ;;  %s1767_s2 = inlined_call_operand.vmem [shape: f32[1,16], index: 2, kind: input, shape index: {}]   ;;  %s1768_s3 = inlined_call_operand.vmem [shape: bf16[16,64], index: 3, kind: input, shape index: {}]   ;;  %s1769_s4 = inlined_call_operand.vmem [shape: f32[1,64], index: 4, kind: input, shape index: {}]   ;;  %s1770_s5 = inlined_call_operand.vmem [shape: bf16[256,64], index: 5, kind: output, shape index: {0}]   ;;  %s1771_s6 = inlined_call_operand.hbm [shape: f32[1,64], index: 6, kind: output, shape index: {1}]   ;;  %s1772_s7 = inlined_call_operand.hbm [shape: f32[1,64], index: 7, kind: output, shape index: {2}]  }
   0x1   :  { %v1042_v0 = vld [vmem:[%s1768_s3] sm:$0xff]   ;;  %v27_v2 = vld [vmem:[%s1765_s0 + $0x8] sm:$0xff]  ;;  %v28_v7 = vld [vmem:[%s1765_s0 + $0x10] sm:$0xff] }
   0x2   :  { %v26_v1 = vld [vmem:[%s1765_s0] sm:$0xff]  ;;  %940 = vmatprep.subr.bf16.mxu0 %v1042_v0  ;;  %v29_v8 = vld [vmem:[%s1765_s0 + $0x18] sm:$0xff]  ;;  %v31_v12 = vld [vmem:[%s1765_s0 + $0x28] sm:$0xff] }
   0x3   :  { %v1147_v3 = vld [vmem:[%s1766_s1] ss:$0 sm:$0xff]  ;;  %941 = vmatpush3.bf16.msra.mxu0 %v1042_v0  ;;  %v32_v13 = vld [vmem:[%s1765_s0 + $0x30] sm:$0xff]  ;;  %v33_v18 = vld [vmem:[%s1765_s0 + $0x38] sm:$0xff] }
   0x4   :  { %v65_v4 = vmul.f32 %v1147_v3, %v26_v1  ;;  %v66_v5 = vmul.f32 %v1147_v3, %v27_v2  ;;  %v1154_v6 = vld [vmem:[%s1767_s2] ss:$0 sm:$0xff]  ;;  %v67_v9 = vmul.f32 %v1147_v3, %v28_v7  ;;  %v68_v10 = vmul.f32 %v1147_v3, %v29_v8  ;;  %v35_v20 = vld [vmem:[%s1765_s0 + $0x48] sm:$0xff]  ;;  %v36_v36 = vld [vmem:[%s1765_s0 + $0x50] sm:$0xff] }
   0x5   :  { %v30_v11 = vld [vmem:[%s1765_s0 + $0x20] sm:$0xff]  ;;  %v70_v17 = vmul.f32 %v1147_v3, %v31_v12  ;;  %v71_v23 = vmul.f32 %v1147_v3, %v32_v13  ;;  %v72_v24 = vmul.f32 %v1147_v3, %v33_v18  ;;  %v74_v30 = vmul.f32 %v1147_v3, %v35_v20  ;;  %v37_v37 = vld [vmem:[%s1765_s0 + $0x58] sm:$0xff]  ;;  %v39_v39 = vld [vmem:[%s1765_s0 + $0x68] sm:$0xff] }
   0x6   :  { %v104_v14 = vadd.f32 %v1154_v6, %v65_v4  ;;  %v105_v15 = vadd.f32 %v1154_v6, %v66_v5  ;;  %v69_v16 = vmul.f32 %v1147_v3, %v30_v11  ;;  %v34_v19 = vld [vmem:[%s1765_s0 + $0x40] sm:$0xff]  ;;  %v106_v21 = vadd.f32 %v1154_v6, %v67_v9 }
   0x7   :  { %v107_v22 = vadd.f32 %v1154_v6, %v68_v10  ;;  %v109_v27 = vadd.f32 %v1154_v6, %v70_v17  ;;  %v73_v28 = vmul.f32 %v1147_v3, %v34_v19  ;;  %v110_v32 = vadd.f32 %v1154_v6, %v71_v23  ;;  %v38_v38 = vld [vmem:[%s1765_s0 + $0x60] sm:$0xff] }
   0x8   :  { %v136_v25 = vpack.c.bf16 %v105_v15, %v104_v14  ;;  %v108_v26 = vadd.f32 %v1154_v6, %v69_v16  ;;  %v111_v33 = vadd.f32 %v1154_v6, %v72_v24  ;;  %v113_v35 = vadd.f32 %v1154_v6, %v74_v30 }
   0x9   :  { %v137_v29 = vpack.c.bf16 %v107_v22, %v106_v21  ;;  %v112_v34 = vadd.f32 %v1154_v6, %v73_v28 }
   0xa   :  { %942 = vmatprep.mubr.msk.bf16.mxu0 %vm167_vm0, %v136_v25  ;;  %v138_v31 = vpack.c.bf16 %v109_v27, %v108_v26 }
   0xb   :  { %943 = vmatmul.mubr.msk.bf16.vlgmr.msra.gmra.mrb[0].mxu0 %vm167_vm0, %v137_v29 }
   0xc   :  { %946 = vmatprep.mubr.msk.bf16.mxu0 %vm167_vm0, %v138_v31 }
   0xd   :  { %14 = vsyncpa [#allocation5], 0  ;;  %v139_v40 = vpack.c.bf16 %v111_v33, %v110_v32  ;;  %v75_v41 = vmul.f32 %v1147_v3, %v36_v36  ;;  %v76_v42 = vmul.f32 %v1147_v3, %v37_v37  ;;  %v140_v43 = vpack.c.bf16 %v113_v35, %v112_v34  ;;  %v40_v50 = vld [vmem:[%s1765_s0 + $0x70] sm:$0xff]  ;;  %v41_v51 = vld [vmem:[%s1765_s0 + $0x78] sm:$0xff] }
   0xe   :  { %v77_v44 = vmul.f32 %v1147_v3, %v38_v38  ;;  %v78_v45 = vmul.f32 %v1147_v3, %v39_v39  ;;  %v42_v52 = vld [vmem:[%s1765_s0 + $0x80] sm:$0xff]  ;;  %v43_v53 = vld [vmem:[%s1765_s0 + $0x88] sm:$0xff]  ;;  %v79_v55 = vmul.f32 %v1147_v3, %v40_v50  ;;  %v80_v56 = vmul.f32 %v1147_v3, %v41_v51  ;;  %v44_v0 = vld [vmem:[%s1765_s0 + $0x90] sm:$0xff] }
   0xf   :  { %v114_v46 = vadd.f32 %v1154_v6, %v75_v41  ;;  %v115_v47 = vadd.f32 %v1154_v6, %v76_v42  ;;  %v81_v58 = vmul.f32 %v1147_v3, %v42_v52  ;;  %v82_v59 = vmul.f32 %v1147_v3, %v43_v53  ;;  %v45_v1 = vld [vmem:[%s1765_s0 + $0x98] sm:$0xff]  ;;  %v46_v2 = vld [vmem:[%s1765_s0 + $0xa0] sm:$0xff]  ;;  %v47_v4 = vld [vmem:[%s1765_s0 + $0xa8] sm:$0xff] }
  0x10   :  { %v116_v48 = vadd.f32 %v1154_v6, %v77_v44  ;;  %v117_v49 = vadd.f32 %v1154_v6, %v78_v45  ;;  %v118_v60 = vadd.f32 %v1154_v6, %v79_v55  ;;  %v119_v61 = vadd.f32 %v1154_v6, %v80_v56  ;;  %v48_v16 = vld [vmem:[%s1765_s0 + $0xb0] sm:$0xff]  ;;  %v49_v17 = vld [vmem:[%s1765_s0 + $0xb8] sm:$0xff]  ;;  %v50_v18 = vld [vmem:[%s1765_s0 + $0xc0] sm:$0xff] }
  0x11   :  { %v141_v54 = vpack.c.bf16 %v115_v47, %v114_v46  ;;  %v120_v62 = vadd.f32 %v1154_v6, %v81_v58  ;;  %v121_v63 = vadd.f32 %v1154_v6, %v82_v59  ;;  %v83_v7 = vmul.f32 %v1147_v3, %v44_v0  ;;  %v51_v19 = vld [vmem:[%s1765_s0 + $0xc8] sm:$0xff]  ;;  %v52_v30 = vld [vmem:[%s1765_s0 + $0xd0] sm:$0xff]  ;;  %v53_v31 = vld [vmem:[%s1765_s0 + $0xd8] sm:$0xff] }
  0x12   :  { %v142_v57 = vpack.c.bf16 %v117_v49, %v116_v48  ;;  %v143_v5 = vpack.c.bf16 %v119_v61, %v118_v60  ;;  %v84_v8 = vmul.f32 %v1147_v3, %v45_v1  ;;  %v85_v10 = vmul.f32 %v1147_v3, %v46_v2  ;;  %v54_v32 = vld [vmem:[%s1765_s0 + $0xe0] sm:$0xff]  ;;  %v55_v33 = vld [vmem:[%s1765_s0 + $0xe8] sm:$0xff]  ;;  %v56_v44 = vld [vmem:[%s1765_s0 + $0xf0] sm:$0xff] }
  0x13   :  { %947 = vmatmul.mubr.msk.bf16.gmra.mrb[4].mxu0 %vm167_vm0, %v139_v40  ;;  %v144_v9 = vpack.c.bf16 %v121_v63, %v120_v62  ;;  %v86_v11 = vmul.f32 %v1147_v3, %v47_v4  ;;  %v122_v12 = vadd.f32 %v1154_v6, %v83_v7  ;;  %v87_v21 = vmul.f32 %v1147_v3, %v48_v16  ;;  %v57_v45 = vld [vmem:[%s1765_s0 + $0xf8] sm:$0xff] }
  0x14   :  { %950 = vmatprep.mubr.msk.bf16.mxu0 %vm167_vm0, %v140_v43  ;;  %v123_v13 = vadd.f32 %v1154_v6, %v84_v8  ;;  %v124_v14 = vadd.f32 %v1154_v6, %v85_v10  ;;  %v88_v22 = vmul.f32 %v1147_v3, %v49_v17  ;;  %v89_v24 = vmul.f32 %v1147_v3, %v50_v18 }
  0x15   :  { %v125_v15 = vadd.f32 %v1154_v6, %v86_v11  ;;  %v90_v25 = vmul.f32 %v1147_v3, %v51_v19  ;;  %v126_v26 = vadd.f32 %v1154_v6, %v87_v21  ;;  %v91_v35 = vmul.f32 %v1147_v3, %v52_v30 }
  0x16   :  { %v145_v20 = vpack.c.bf16 %v123_v13, %v122_v12  ;;  %v127_v27 = vadd.f32 %v1154_v6, %v88_v22  ;;  %v128_v28 = vadd.f32 %v1154_v6, %v89_v24  ;;  %v92_v36 = vmul.f32 %v1147_v3, %v53_v31 }
  0x17   :  { %v146_v23 = vpack.c.bf16 %v125_v15, %v124_v14  ;;  %v129_v29 = vadd.f32 %v1154_v6, %v90_v25  ;;  %v93_v38 = vmul.f32 %v1147_v3, %v54_v32  ;;  %v94_v39 = vmul.f32 %v1147_v3, %v55_v33 }
  0x18   :  { %v147_v34 = vpack.c.bf16 %v127_v27, %v126_v26  ;;  %v130_v40 = vadd.f32 %v1154_v6, %v91_v35  ;;  %v131_v41 = vadd.f32 %v1154_v6, %v92_v36  ;;  %v95_v47 = vmul.f32 %v1147_v3, %v56_v44 }
  0x19   :  { %v148_v37 = vpack.c.bf16 %v129_v29, %v128_v28  ;;  %v132_v42 = vadd.f32 %v1154_v6, %v93_v38  ;;  %v133_v43 = vadd.f32 %v1154_v6, %v94_v39  ;;  %v96_v48 = vmul.f32 %v1147_v3, %v57_v45 }
  0x1a   :  { %v149_v46 = vpack.c.bf16 %v131_v41, %v130_v40  ;;  %v134_v50 = vadd.f32 %v1154_v6, %v95_v47  ;;  %v1091_v53 = vmov 1.0   ;;  %vm505_vm1 = vcmask 519168  }
  0x1b   :  { %951 = vmatmul.mubr.msk.bf16.gmra.mrb[8].mxu0 %vm167_vm0, %v141_v54  ;;  %v150_v49 = vpack.c.bf16 %v133_v43, %v132_v42  ;;  %v135_v51 = vadd.f32 %v1154_v6, %v96_v48  ;;  %623 = vmatprep.mubr.f32.mxu1 %v1091_v53  ;;  %v1328_v54 = vld [vmem:[%s1769_s4] ss:$0 sm:$0xff]  ;;  %vm542_vm2 = vcmask 516096  }
  0x1c   :  { %954 = vmatprep.mubr.msk.bf16.mxu0 %vm167_vm0, %v142_v57 }
  0x1d   :  { %v151_v52 = vpack.c.bf16 %v135_v51, %v134_v50 }
  0x23   :  { %955 = vmatmul.mubr.msk.bf16.gmra.mrb[12].mxu0 %vm167_vm0, %v143_v5 }
  0x24   :  { %958 = vmatprep.mubr.msk.bf16.mxu0 %vm167_vm0, %v144_v9 }
  0x2b   :  { %959 = vmatmul.mubr.msk.bf16.gmra.mrb[16].mxu0 %vm167_vm0, %v145_v20 }
  0x2c   :  { %962 = vmatprep.mubr.msk.bf16.mxu0 %vm167_vm0, %v146_v23 }
  0x33   :  { %963 = vmatmul.mubr.msk.bf16.gmra.mrb[20].mxu0 %vm167_vm0, %v147_v34 }
  0x34   :  { %966 = vmatprep.mubr.msk.bf16.mxu0 %vm167_vm0, %v148_v37 }
  0x3b   :  { %967 = vmatmul.mubr.msk.bf16.gmra.mrb[24].mxu0 %vm167_vm0, %v149_v46 }
  0x3c   :  { %970 = vmatprep.mubr.msk.bf16.mxu0 %vm167_vm0, %v150_v49 }
  0x43   :  { %971 = vmatmul.mubr.msk.bf16.gmra.mrb[28].mxu0 %vm167_vm0, %v151_v52 }
  0xde   :  { %v944_v3 = vpop.f32.mrb[0].mxu0 }
  0xdf   :  { %v1331_v55 = vadd.f32 %v944_v3, %v1328_v54  ;;  %v250_v56 = vpop.f32.mrb[1].mxu0 }
  0xe0   :  { %v1334_v6 = vadd.f32 %v1328_v54, %v250_v56  ;;  %v945_v57 = vpop.f32.mrb[2].mxu0 }
  0xe1   :  { %v823_v58 = vpack.c.bf16 %v1331_v55, %v1331_v55  ;;  %v1339_v59 = vadd.f32 %v945_v57, %v1328_v54  ;;  %v253_v60 = vpop.f32.mrb[3].mxu0  ;;  %v1352_v63 = vmul.f32 %v1331_v55, %v1331_v55 }
  0xe2   :  { %v821_v61 = vpack.c.bf16 %v1334_v6, %v1334_v6  ;;  %v1344_v62 = vadd.f32 %v1328_v54, %v253_v60  ;;  %v1368_v4 = vmul.f32 %v1334_v6, %v1334_v6 }
  0xe3   :  { %508 = vst.msk [vmem:[%s1770_s5 + $0x8] sm:$0xf] %vm505_vm1, %v823_v58  ;;  %v824_v0 = vpack.c.bf16 %v1339_v59, %v1339_v59  ;;  %v1358_v1 = vmul.f32 %v1339_v59, %v1339_v59  ;;  %v980_v2 = vpack.c.bf16 %v1339_v59, %v1331_v55 }
  0xe4   :  { %506 = vst.msk [vmem:[%s1770_s5] sm:$0xf] %vm505_vm1, %v821_v61  ;;  %v822_v5 = vpack.c.bf16 %v1344_v62, %v1344_v62  ;;  %v1374_v7 = vmul.f32 %v1344_v62, %v1344_v62  ;;  %v976_v8 = vpack.c.bf16 %v1344_v62, %v1334_v6 }
  0xe5   :  { %509 = vst.msk [vmem:[%s1770_s5 + $0xc] sm:$0xf] %vm505_vm1, %v824_v0  ;;  %v1012_v9 = vpack.c.bf16 %v1358_v1, %v1352_v63 }
  0xe6   :  { %507 = vst.msk [vmem:[%s1770_s5 + $0x4] sm:$0xf] %vm505_vm1, %v822_v5  ;;  %v1008_v10 = vpack.c.bf16 %v1374_v7, %v1368_v4  ;;  %v948_v11 = vpop.f32.mrb[4].mxu0 }
  0xe7   :  { %v1391_v12 = vadd.f32 %v948_v11, %v1328_v54  ;;  %v266_v13 = vpop.f32.mrb[5].mxu0 }
  0xe8   :  { %v1394_v14 = vadd.f32 %v1328_v54, %v266_v13  ;;  %v949_v15 = vpop.f32.mrb[6].mxu0 }
  0xe9   :  { %v827_v16 = vpack.c.bf16 %v1391_v12, %v1391_v12  ;;  %v1399_v17 = vadd.f32 %v949_v15, %v1328_v54  ;;  %v269_v18 = vpop.f32.mrb[7].mxu0  ;;  %v1412_v21 = vmul.f32 %v1391_v12, %v1391_v12 }
  0xea   :  { %v825_v19 = vpack.c.bf16 %v1394_v14, %v1394_v14  ;;  %v1404_v20 = vadd.f32 %v1328_v54, %v269_v18  ;;  %v1428_v25 = vmul.f32 %v1394_v14, %v1394_v14 }
  0xeb   :  { %512 = vst.msk [vmem:[%s1770_s5 + $0x18] sm:$0xf] %vm505_vm1, %v827_v16  ;;  %v828_v22 = vpack.c.bf16 %v1399_v17, %v1399_v17  ;;  %v1418_v23 = vmul.f32 %v1399_v17, %v1399_v17  ;;  %v988_v24 = vpack.c.bf16 %v1399_v17, %v1391_v12 }
  0xec   :  { %510 = vst.msk [vmem:[%s1770_s5 + $0x10] sm:$0xf] %vm505_vm1, %v825_v19  ;;  %v826_v26 = vpack.c.bf16 %v1404_v20, %v1404_v20  ;;  %v1434_v27 = vmul.f32 %v1404_v20, %v1404_v20  ;;  %v984_v28 = vpack.c.bf16 %v1404_v20, %v1394_v14 }
  0xed   :  { %513 = vst.msk [vmem:[%s1770_s5 + $0x1c] sm:$0xf] %vm505_vm1, %v828_v22  ;;  %v1020_v29 = vpack.c.bf16 %v1418_v23, %v1412_v21 }
  0xee   :  { %511 = vst.msk [vmem:[%s1770_s5 + $0x14] sm:$0xf] %vm505_vm1, %v826_v26  ;;  %v1016_v30 = vpack.c.bf16 %v1434_v27, %v1428_v25  ;;  %v952_v31 = vpop.f32.mrb[8].mxu0 }
  0xef   :  { %v1451_v32 = vadd.f32 %v952_v31, %v1328_v54  ;;  %v282_v33 = vpop.f32.mrb[9].mxu0 }
  0xf0   :  { %v1454_v34 = vadd.f32 %v1328_v54, %v282_v33  ;;  %v953_v35 = vpop.f32.mrb[10].mxu0 }
  0xf1   :  { %v831_v36 = vpack.c.bf16 %v1451_v32, %v1451_v32  ;;  %v1459_v37 = vadd.f32 %v953_v35, %v1328_v54  ;;  %v285_v38 = vpop.f32.mrb[11].mxu0  ;;  %v1472_v41 = vmul.f32 %v1451_v32, %v1451_v32 }
  0xf2   :  { %v829_v39 = vpack.c.bf16 %v1454_v34, %v1454_v34  ;;  %v1464_v40 = vadd.f32 %v1328_v54, %v285_v38  ;;  %v1488_v45 = vmul.f32 %v1454_v34, %v1454_v34 }
  0xf3   :  { %516 = vst.msk [vmem:[%s1770_s5 + $0x28] sm:$0xf] %vm505_vm1, %v831_v36  ;;  %v832_v42 = vpack.c.bf16 %v1459_v37, %v1459_v37  ;;  %v1478_v43 = vmul.f32 %v1459_v37, %v1459_v37  ;;  %v996_v44 = vpack.c.bf16 %v1459_v37, %v1451_v32 }
  0xf4   :  { %514 = vst.msk [vmem:[%s1770_s5 + $0x20] sm:$0xf] %vm505_vm1, %v829_v39  ;;  %v830_v46 = vpack.c.bf16 %v1464_v40, %v1464_v40  ;;  %v1494_v47 = vmul.f32 %v1464_v40, %v1464_v40  ;;  %v992_v48 = vpack.c.bf16 %v1464_v40, %v1454_v34 }
  0xf5   :  { %517 = vst.msk [vmem:[%s1770_s5 + $0x2c] sm:$0xf] %vm505_vm1, %v832_v42  ;;  %v1774_v1 = vpack.c.bf16 %v1478_v43, %v1472_v41 }
  0xf6   :  { %515 = vst.msk [vmem:[%s1770_s5 + $0x24] sm:$0xf] %vm505_vm1, %v830_v46  ;;  %v956_v51 = vpop.f32.mrb[12].mxu0  ;;  %v1773_v63 = vpack.c.bf16 %v1494_v47, %v1488_v45 }
  0xf7   :  { %v1511_v52 = vadd.f32 %v956_v51, %v1328_v54  ;;  %v298_v3 = vpop.f32.mrb[13].mxu0 }
  0xf8   :  { %v1514_v56 = vadd.f32 %v1328_v54, %v298_v3  ;;  %v957_v57 = vpop.f32.mrb[14].mxu0 }
  0xf9   :  { %v835_v58 = vpack.c.bf16 %v1511_v52, %v1511_v52  ;;  %v1519_v60 = vadd.f32 %v957_v57, %v1328_v54  ;;  %v301_v61 = vpop.f32.mrb[15].mxu0  ;;  %v1532_v11 = vmul.f32 %v1511_v52, %v1511_v52 }
  0xfa   :  { %v833_v0 = vpack.c.bf16 %v1514_v56, %v1514_v56  ;;  %v1524_v5 = vadd.f32 %v1328_v54, %v301_v61  ;;  %v1548_v18 = vmul.f32 %v1514_v56, %v1514_v56 }
  0xfb   :  { %520 = vst.msk [vmem:[%s1770_s5 + $0x38] sm:$0xf] %vm505_vm1, %v835_v58  ;;  %v836_v13 = vpack.c.bf16 %v1519_v60, %v1519_v60  ;;  %v1538_v15 = vmul.f32 %v1519_v60, %v1519_v60  ;;  %v1004_v16 = vpack.c.bf16 %v1519_v60, %v1511_v52 }
  0xfc   :  { %518 = vst.msk [vmem:[%s1770_s5 + $0x30] sm:$0xf] %vm505_vm1, %v833_v0  ;;  %v834_v19 = vpack.c.bf16 %v1524_v5, %v1524_v5  ;;  %v1554_v22 = vmul.f32 %v1524_v5, %v1524_v5  ;;  %v1000_v26 = vpack.c.bf16 %v1524_v5, %v1514_v56 }
  0xfd   :  { %521 = vst.msk [vmem:[%s1770_s5 + $0x3c] sm:$0xf] %vm505_vm1, %v836_v13  ;;  %v1776_v7 = vpack.c.bf16 %v1538_v15, %v1532_v11 }
  0xfe   :  { %519 = vst.msk [vmem:[%s1770_s5 + $0x34] sm:$0xf] %vm505_vm1, %v834_v19  ;;  %v960_v35 = vpop.f32.mrb[16].mxu0  ;;  %v1775_v4 = vpack.c.bf16 %v1554_v22, %v1548_v18 }
  0xff   :  { %v323_v36 = vadd.f32 %v960_v35, %v1328_v54  ;;  %v314_v38 = vpop.f32.mrb[17].mxu0 }
 0x100   :  { %v315_v39 = vadd.f32 %v1328_v54, %v314_v38  ;;  %v961_v42 = vpop.f32.mrb[18].mxu0 }
 0x101   :  { %v839_v46 = vpack.c.bf16 %v323_v36, %v323_v36  ;;  %v326_v51 = vadd.f32 %v961_v42, %v1328_v54  ;;  %v317_v3 = vpop.f32.mrb[19].mxu0  ;;  %v1578_v61 = vmul.f32 %v323_v36, %v323_v36 }
 0x102   :  { %v837_v57 = vpack.c.bf16 %v315_v39, %v315_v39  ;;  %v318_v58 = vadd.f32 %v1328_v54, %v317_v3  ;;  %v1586_v35 = vmul.f32 %v315_v39, %v315_v39 }
 0x103   :  { %524 = vst.msk [vmem:[%s1770_s5 + $0x48] sm:$0xf] %vm505_vm1, %v839_v46  ;;  %v840_v0 = vpack.c.bf16 %v326_v51, %v326_v51  ;;  %v1580_v13 = vmul.f32 %v326_v51, %v326_v51  ;;  %v978_v19 = vpack.c.bf16 %v326_v51, %v323_v36 }
 0x104   :  { %522 = vst.msk [vmem:[%s1770_s5 + $0x40] sm:$0xf] %vm505_vm1, %v837_v57  ;;  %v838_v38 = vpack.c.bf16 %v318_v58, %v318_v58  ;;  %v1588_v42 = vmul.f32 %v318_v58, %v318_v58  ;;  %v974_v3 = vpack.c.bf16 %v318_v58, %v315_v39 }
 0x105   :  { %525 = vst.msk [vmem:[%s1770_s5 + $0x4c] sm:$0xf] %vm505_vm1, %v840_v0  ;;  %v1010_v46 = vpack.c.bf16 %v1580_v13, %v1578_v61 }
 0x106   :  { %523 = vst.msk [vmem:[%s1770_s5 + $0x44] sm:$0xf] %vm505_vm1, %v838_v38  ;;  %v964_v36 = vpop.f32.mrb[20].mxu0  ;;  %975 = vmatprep.subr.bf16.mxu1 %v974_v3  ;;  %v1006_v51 = vpack.c.bf16 %v1588_v42, %v1586_v35 }
 0x107   :  { %v339_v39 = vadd.f32 %v964_v36, %v1328_v54  ;;  %v330_v57 = vpop.f32.mrb[21].mxu0  ;;  %977 = vmatpush3.bf16.msra.mxu1 %v976_v8 }
 0x108   :  { %v331_v58 = vadd.f32 %v1328_v54, %v330_v57  ;;  %v965_v0 = vpop.f32.mrb[22].mxu0  ;;  %979 = vmatprep.subr.bf16.mxu1 %v978_v19 }
 0x109   :  { %v843_v31 = vpack.c.bf16 %v339_v39, %v339_v39  ;;  %v342_v33 = vadd.f32 %v965_v0, %v1328_v54  ;;  %v333_v38 = vpop.f32.mrb[23].mxu0  ;;  %v1613_v36 = vmul.f32 %v339_v39, %v339_v39 }
 0x10a   :  { %v841_v49 = vpack.c.bf16 %v331_v58, %v331_v58  ;;  %v334_v3 = vadd.f32 %v1328_v54, %v333_v38  ;;  %v1624_v19 = vmul.f32 %v331_v58, %v331_v58 }
 0x10b   :  { %528 = vst.msk [vmem:[%s1770_s5 + $0x58] sm:$0xf] %vm505_vm1, %v843_v31  ;;  %v844_v6 = vpack.c.bf16 %v342_v33, %v342_v33  ;;  %v1615_v62 = vmul.f32 %v342_v33, %v342_v33  ;;  %981 = vmatpush3.bf16.msra.mxu1 %v980_v2  ;;  %v986_v8 = vpack.c.bf16 %v342_v33, %v339_v39 }
 0x10c   :  { %526 = vst.msk [vmem:[%s1770_s5 + $0x50] sm:$0xf] %vm505_vm1, %v841_v49  ;;  %v842_v57 = vpack.c.bf16 %v334_v3, %v334_v3  ;;  %v1626_v0 = vmul.f32 %v334_v3, %v334_v3  ;;  %v982_v31 = vpack.c.bf16 %v334_v3, %v331_v58 }
 0x10d   :  { %529 = vst.msk [vmem:[%s1770_s5 + $0x5c] sm:$0xf] %vm505_vm1, %v844_v6  ;;  %v1018_v55 = vpack.c.bf16 %v1615_v62, %v1613_v36 }
 0x10e   :  { %527 = vst.msk [vmem:[%s1770_s5 + $0x54] sm:$0xf] %vm505_vm1, %v842_v57  ;;  %v968_v59 = vpop.f32.mrb[24].mxu0  ;;  %983 = vmatprep.subr.bf16.mxu1 %v982_v31  ;;  %v1014_v2 = vpack.c.bf16 %v1626_v0, %v1624_v19 }
 0x10f   :  { %v355_v49 = vadd.f32 %v968_v59, %v1328_v54  ;;  %v346_v33 = vpop.f32.mrb[25].mxu0  ;;  %985 = vmatpush3.bf16.msra.mxu1 %v984_v28 }
 0x110   :  { %v347_v39 = vadd.f32 %v1328_v54, %v346_v33  ;;  %v969_v58 = vpop.f32.mrb[26].mxu0  ;;  %987 = vmatprep.subr.bf16.mxu1 %v986_v8 }
 0x111   :  { %v847_v38 = vpack.c.bf16 %v355_v49, %v355_v49  ;;  %v358_v3 = vadd.f32 %v969_v58, %v1328_v54  ;;  %v349_v6 = vpop.f32.mrb[27].mxu0  ;;  %v659_v59 = vmul.f32 %v355_v49, %v355_v49 }
 0x112   :  { %v845_v57 = vpack.c.bf16 %v347_v39, %v347_v39  ;;  %v350_v31 = vadd.f32 %v1328_v54, %v349_v6  ;;  %v657_v28 = vmul.f32 %v347_v39, %v347_v39 }
 0x113   :  { %532 = vst.msk [vmem:[%s1770_s5 + $0x68] sm:$0xf] %vm505_vm1, %v847_v38  ;;  %v848_v50 = vpack.c.bf16 %v358_v3, %v358_v3  ;;  %v660_v14 = vmul.f32 %v358_v3, %v358_v3  ;;  %989 = vmatpush3.bf16.msra.mxu1 %v988_v24  ;;  %v994_v20 = vpack.c.bf16 %v358_v3, %v355_v49 }
 0x114   :  { %530 = vst.msk [vmem:[%s1770_s5 + $0x60] sm:$0xf] %vm505_vm1, %v845_v57  ;;  %v846_v8 = vpack.c.bf16 %v350_v31, %v350_v31  ;;  %v658_v33 = vmul.f32 %v350_v31, %v350_v31  ;;  %v990_v58 = vpack.c.bf16 %v350_v31, %v347_v39 }
 0x115   :  { %533 = vst.msk [vmem:[%s1770_s5 + $0x6c] sm:$0xf] %vm505_vm1, %v848_v50  ;;  %v1026_v38 = vpack.c.bf16 %v660_v14, %v659_v59 }
 0x116   :  { %531 = vst.msk [vmem:[%s1770_s5 + $0x64] sm:$0xf] %vm505_vm1, %v846_v8  ;;  %v972_v12 = vpop.f32.mrb[28].mxu0  ;;  %991 = vmatprep.subr.bf16.mxu1 %v990_v58  ;;  %v1022_v17 = vpack.c.bf16 %v658_v33, %v657_v28 }
 0x117   :  { %v371_v24 = vadd.f32 %v972_v12, %v1328_v54  ;;  %v362_v49 = vpop.f32.mrb[29].mxu0  ;;  %993 = vmatpush3.bf16.msra.mxu1 %v992_v48 }
 0x118   :  { %v363_v39 = vadd.f32 %v1328_v54, %v362_v49  ;;  %v973_v3 = vpop.f32.mrb[30].mxu0  ;;  %995 = vmatprep.subr.bf16.mxu1 %v994_v20 }
 0x119   :  { %v851_v50 = vpack.c.bf16 %v371_v24, %v371_v24  ;;  %v374_v6 = vadd.f32 %v973_v3, %v1328_v54  ;;  %v365_v57 = vpop.f32.mrb[31].mxu0  ;;  %v663_v14 = vmul.f32 %v371_v24, %v371_v24 }
 0x11a   :  { %v849_v31 = vpack.c.bf16 %v363_v39, %v363_v39  ;;  %v366_v59 = vadd.f32 %v1328_v54, %v365_v57  ;;  %v661_v48 = vmul.f32 %v363_v39, %v363_v39 }
 0x11b   :  { %536 = vst.msk [vmem:[%s1770_s5 + $0x78] sm:$0xf] %vm505_vm1, %v851_v50  ;;  %v852_v28 = vpack.c.bf16 %v374_v6, %v374_v6  ;;  %v664_v34 = vmul.f32 %v374_v6, %v374_v6  ;;  %997 = vmatpush3.bf16.msra.mxu1 %v996_v44  ;;  %v1002_v40 = vpack.c.bf16 %v374_v6, %v371_v24 }
 0x11c   :  { %534 = vst.msk [vmem:[%s1770_s5 + $0x70] sm:$0xf] %vm505_vm1, %v849_v31  ;;  %v850_v54 = vpack.c.bf16 %v366_v59, %v366_v59  ;;  %v662_v20 = vmul.f32 %v366_v59, %v366_v59  ;;  %v998_v8 = vpack.c.bf16 %v366_v59, %v363_v39 }
 0x11d   :  { %537 = vst.msk [vmem:[%s1770_s5 + $0x7c] sm:$0xf] %vm505_vm1, %v852_v28  ;;  %v1034_v33 = vpack.c.bf16 %v664_v34, %v663_v14 }
 0x11e   :  { %535 = vst.msk [vmem:[%s1770_s5 + $0x74] sm:$0xf] %vm505_vm1, %v850_v54  ;;  %999 = vmatprep.subr.bf16.mxu1 %v998_v8  ;;  %v1030_v32 = vpack.c.bf16 %v662_v20, %v661_v48  ;;  %s1093_s5 = smov [#allocation2]  }
 0x11f   :  { %1001 = vmatpush3.bf16.msra.mxu1 %v1000_v26  ;;  %s745_s24 = sshll.u32 %s1093_s5, 4  ;;  %s746_s24 = int_to_ptr.vmem [resolvable:$true] %s745_s24 }
 0x120   :  { %1003 = vmatprep.subr.bf16.mxu1 %v1002_v40  ;;  %s1043_s25 = scalar_lea.vmem %s746_s24, 16  ;;  %s1047_s26 = scalar_lea.vmem %s746_s24, 32 }
 0x121   :  { %p1044_p0 = scmp.ne.s32.totalorder %s746_s24, %s1043_s25  ;;  %p1048_p1 = scmp.lt.s32.totalorder %s746_s24, %s746_s24 }
 0x122   :  { %p1049_p2 = scmp.lt.s32.totalorder %s1047_s26, %s1043_s25 }
 0x123   :  { %1005 = vmatpush3.bf16.msra.mxu1 %v1004_v16 }
 0x124   :  { %1007 = vmatprep.subr.bf16.mxu1 %v1006_v51  ;;  %p1050_p3 = por %p1049_p2, %p1048_p1 }
 0x126   :  { %624 = vmatmul.mubr.f32.vlgmr.msra.gmra.mrb[0].mxu1 %v1091_v53  ;;  %p1051_p4 = pnand %p1050_p3, %p1044_p0 }
 0x127   :  { %1009 = vmatpush3.bf16.msra.mxu1 %v1008_v10  ;;  %729 = vmatprep.mubr.f32.mxu1 %v1091_v53 }
 0x128   :  { %1011 = vmatprep.subr.bf16.mxu1 %v1010_v46 }
 0x12b   :  { %1013 = vmatpush3.bf16.msra.mxu1 %v1012_v9  ;;  %v1092_v9 = vmov 0.0  }
 0x12c   :  { %1015 = vmatprep.subr.bf16.mxu1 %v1014_v2  ;;  %543 = vst.msk [vmem:[#allocation2] sm:$0x1] %vm542_vm2, %v1092_v9  ;;  %544 = vst.msk [vmem:[#allocation4] sm:$0x1] %vm542_vm2, %v1092_v9 }
 0x12f   :  { %1017 = vmatpush3.bf16.msra.mxu1 %v1016_v30 }
 0x130   :  { %1019 = vmatprep.subr.bf16.mxu1 %v1018_v55 }
 0x133   :  { %1021 = vmatpush3.bf16.msra.mxu1 %v1020_v29  ;;  %v558_v21 = vld [vmem:[#allocation2] sm:$0x1] }
 0x134   :  { %1023 = vmatprep.subr.bf16.mxu1 %v1022_v17 }
 0x137   :  { %1025 = vmatpush3.bf16.msra.mxu1 %v1773_v63 }
 0x138   :  { %1027 = vmatprep.subr.bf16.mxu1 %v1026_v38 }
 0x13b   :  { %1029 = vmatpush3.bf16.msra.mxu1 %v1774_v1 }
 0x13c   :  { %1031 = vmatprep.subr.bf16.mxu1 %v1030_v32 }
 0x13f   :  { %1033 = vmatpush3.bf16.msra.mxu1 %v1775_v4 }
 0x140   :  { %1035 = vmatprep.subr.bf16.mxu1 %v1034_v33 }
 0x143   :  { %1037 = vmatpush3.bf16.msra.mxu1 %v1776_v7 }
 0x146   :  { %730 = vmatmul.mubr.f32.vlgmr.msra.gmra.mrb[2].mxu1 %v1091_v53 }
 0x1f9   :  { %v902_v10 = vpop.f32.mrb[0].mxu1 }
 0x1fa   :  { %v903_v23 = vpop.f32.mrb[1].mxu1 }
 0x1fb   :  { %v904_v25 = vadd.f32 %v903_v23, %v902_v10 }
 0x1fd   :  { %v629_v27 = vadd.f32 %v904_v25, %v558_v21 }
 0x1ff   :  { %631 = vst.msk [vmem:[#allocation2] sm:$0x1] %vm542_vm2, %v629_v27 }
 0x200   :  { %1054 = shalt.err (!%p1051_p4)
}
 0x201   :  { %s1055_s29 = scalar_lea.hbm %s1771_s6, 16 }
 0x202   :  { %p1056_p5 = scmp.ne.s32.totalorder %s1771_s6, %s1055_s29  ;;  %p1059_p6 = scmp.lt.u32.totalorder %s1055_s29, %s1771_s6 }
 0x204   :  { %p1061_p7 = pnand %p1059_p6, %p1056_p5 }
 0x206   :  { %1064 = shalt.err (!%p1061_p7)
}
 0x207   :  { %748 = dma.vmem_to_hbm [thread:$0]  %s746_s24, 16, %s1771_s6, [#allocation3]   ;;  %v632_v29 = vld [vmem:[#allocation4] sm:$0x1] }
 0x208   :  { %s1094_s12 = smov [#allocation4]  }
 0x209   :  { %s755_s13 = sshll.u32 %s1094_s12, 4  ;;  %s756_s13 = int_to_ptr.vmem [resolvable:$true] %s755_s13 }
 0x20a   :  { %s1065_s1 = scalar_lea.vmem %s756_s13, 16  ;;  %s1069_s14 = scalar_lea.vmem %s756_s13, 32 }
 0x20b   :  { %p1066_p8 = scmp.ne.s32.totalorder %s756_s13, %s1065_s1  ;;  %p1070_p9 = scmp.lt.s32.totalorder %s756_s13, %s756_s13 }
 0x20c   :  { %p1071_p10 = scmp.lt.s32.totalorder %s1069_s14, %s1065_s1 }
 0x20e   :  { %p1072_p11 = por %p1071_p10, %p1070_p9 }
 0x210   :  { %p1073_p12 = pnand %p1072_p11, %p1066_p8 }
 0x219   :  { %v937_v53 = vpop.f32.mrb[2].mxu1 }
 0x21a   :  { %v938_v30 = vpop.f32.mrb[3].mxu1 }
 0x21b   :  { %v939_v37 = vadd.f32 %v938_v30, %v937_v53 }
 0x21d   :  { %v735_v41 = vadd.f32 %v939_v37, %v632_v29 }
 0x21f   :  { %736 = vst.msk [vmem:[#allocation4] sm:$0x1] %vm542_vm2, %v735_v41 }
 0x220   :  { %1076 = shalt.err (!%p1073_p12)
}
 0x221   :  { %s1077_s15 = scalar_lea.hbm %s1772_s7, 16 }
 0x222   :  { %p1078_p13 = scmp.ne.s32.totalorder %s1772_s7, %s1077_s15  ;;  %p1081_p0 = scmp.lt.u32.totalorder %s1077_s15, %s1772_s7 }
 0x224   :  { %p1083_p1 = pnand %p1081_p0, %p1078_p13 }
 0x226   :  { %1086 = shalt.err (!%p1083_p1)
}
 0x227   :  { %758 = dma.vmem_to_hbm [thread:$0]  %s756_s13, 16, %s1772_s7, [#allocation5]  }
 0x228   :  { %1087 = dma.done.wait [#allocation3], 16  }
 0x229   :  { %1088 = vsyncadd [#allocation3], 4294967280 }
 0x22a   :  { %1089 = dma.done.wait [#allocation5], 16  }
 0x22b   :  { %1090 = vsyncadd [#allocation5], 4294967280 }
 0x22c   :  { %767 = vsyncpa [#allocation3], 1 }
 0x22d   :  { %768 = vsyncpa [#allocation5], 1 }

</bundles_post_ra>
